<compile_context>
chip_gen: v7x
topology: tpu7x:2x2x1
jax: 0.10.0
libtpu: 0.0.40
codegen_flags: <defaults>
</compile_context>

<pallas_src>
import jax
import jax.numpy as jnp
from jax.experimental import pallas as pl
from jax.experimental.pallas import tpu as pltpu


# Constants folded for Horner form: inner = x * (K1 + K2 * x^2)
_K1 = 0.7978845608028654       # sqrt(2/pi)
_K2 = 0.044715 * _K1


def _gelu_kernel(x_ref, o_ref):
    x = x_ref[...].astype(jnp.float32)
    inner = x * (_K1 + _K2 * (x * x))
    y = 0.5 * x * (1.0 + jnp.tanh(inner))
    o_ref[...] = y.astype(o_ref.dtype)


def _choose_width(n, last):
    """Pick a lane-dense slab width; reshaping the flat buffer to it is free."""
    last = max(int(last), 1)
    for w in (8192, 4096, 2048, 1024, 512, 256, 128):
        if n % w == 0 and n // w >= 8 and (w > last or last % 128 != 0):
            return w
    return last


def gelu_pallas(x, *, target_block_bytes=4 * 1024 * 1024):
    """Tanh-approx GELU matching the PyTorch reference semantics."""
    orig_shape = x.shape
    orig_dtype = x.dtype
    n = int(x.size)
    if n == 0:
        return x

    last = orig_shape[-1] if x.ndim >= 1 else 1
    w = _choose_width(n, last)
    rows = n // w
    x2 = x.reshape(rows, w)                 # contiguous reshape: no HBM pass

    itemsize = int(x2.dtype.itemsize)
    sub = max(8, 32 // itemsize)            # sublane multiple for this dtype

    if rows <= sub:
        tm = rows                           # block == full sublane extent (legal)
    else:
        # Size block by bytes, aligned to the sublane multiple.
        tm = (target_block_bytes // (w * itemsize)) // sub * sub
        tm = max(sub, tm)
        # Keep >= 2 grid steps when possible (v7x megacore) and never exceed rows.
        half = max(sub, ((rows + 1) // 2) // sub * sub)
        tm = min(tm, half)

    grid_len = (rows + tm - 1) // tm        # partial trailing block; no pad/slice

    cost = pl.CostEstimate(
        flops=8 * n,
        transcendentals=n,
        bytes_accessed=2 * n * itemsize,
    )

    out = pl.pallas_call(
        _gelu_kernel,
        out_shape=jax.ShapeDtypeStruct((rows, w), orig_dtype),
        grid_spec=pltpu.PrefetchScalarGridSpec(
            num_scalar_prefetch=0,
            grid=(grid_len,),
            in_specs=[pl.BlockSpec((tm, w), lambda i: (i, 0))],
            out_specs=pl.BlockSpec((tm, w), lambda i: (i, 0)),
        ),
        compiler_params=pltpu.CompilerParams(
            dimension_semantics=("parallel",),
            vmem_limit_bytes=32 * 1024 * 1024,   # safe on v5e/v6e/v7x
        ),
        cost_estimate=cost,
    )(x2)

    return out.reshape(orig_shape)


def gelu_ref(x):
    xf = x.astype(jnp.float32)
    c = jnp.sqrt(jnp.float32(2.0 / jnp.pi))
    return (0.5 * xf * (1.0 + jnp.tanh(c * (xf + 0.044715 * xf ** 3)))).astype(x.dtype)


if __name__ == "__main__":
    key = jax.random.PRNGKey(0)
    k1, k2 = jax.random.split(key)

    # (batch, seq, hidden) transformer-style activation.
    x = jax.random.normal(k1, (2, 8, 128), dtype=jnp.float32)
    y = jax.block_until_ready(gelu_pallas(x))
    assert y.shape == x.shape and y.dtype == x.dtype
    assert jnp.allclose(y, gelu_ref(x), atol=1e-5, rtol=1e-5)

    # Awkward shape: last dim not a multiple of 128, rows not a multiple of 8.
    # Exercises the partial trailing block path (no pad / slice HBM passes).
    x2 = jax.random.normal(k2, (3, 7, 96), dtype=jnp.float32)
    y2 = jax.block_until_ready(gelu_pallas(x2))
    assert y2.shape == x2.shape and y2.dtype == x2.dtype
    assert jnp.allclose(y2, gelu_ref(x2), atol=1e-5, rtol=1e-5)

    print("KERNEL_OK")
</pallas_src>

<mosaic_0001>
module attributes {stable_mosaic.version = 11 : i64} {
  func.func @_gelu_kernel(%arg0: i32, %arg1: memref<8x256xf32, #tpu.memory_space<vmem>>, %arg2: memref<8x256xf32, #tpu.memory_space<vmem>>) attributes {dimension_semantics = [#tpu.dimension_semantics<parallel>], iteration_bounds = array<i64: 1>, scalar_prefetch = 0 : i64, scratch_operands = 0 : i64, tpu.core_type = #tpu.core_type<tc>, window_params = [{transform_indices = @transform_0, window_bounds = array<i64: 8, 256>}, {transform_indices = @transform_1, window_bounds = array<i64: 8, 256>}]} {
    %c0 = arith.constant 0 : index
    %c0_0 = arith.constant 0 : index
    %0 = vector.load %arg1[%c0, %c0_0] : memref<8x256xf32, #tpu.memory_space<vmem>>, vector<8x256xf32>
    %1 = arith.mulf %0, %0 : vector<8x256xf32>
    %cst = arith.constant 0.0356774069 : f32
    %2 = vector.broadcast %cst : f32 to vector<8x256xf32>
    %3 = arith.mulf %2, %1 : vector<8x256xf32>
    %cst_1 = arith.constant 0.797884583 : f32
    %4 = vector.broadcast %cst_1 : f32 to vector<8x256xf32>
    %5 = arith.addf %4, %3 : vector<8x256xf32>
    %6 = arith.mulf %0, %5 : vector<8x256xf32>
    %cst_2 = arith.constant 5.000000e-01 : f32
    %7 = vector.broadcast %cst_2 : f32 to vector<8x256xf32>
    %8 = arith.mulf %7, %0 : vector<8x256xf32>
    %9 = math.tanh %6 : vector<8x256xf32>
    %cst_3 = arith.constant 1.000000e+00 : f32
    %10 = vector.broadcast %cst_3 : f32 to vector<8x256xf32>
    %11 = arith.addf %10, %9 : vector<8x256xf32>
    %12 = arith.mulf %8, %11 : vector<8x256xf32>
    %c0_4 = arith.constant 0 : index
    %c0_5 = arith.constant 0 : index
    %13 = vector.load %arg2[%c0_4, %c0_5] : memref<8x256xf32, #tpu.memory_space<vmem>>, vector<8x256xf32>
    tpu.vector_store %arg2[%c0_4, %c0_5], %12 {strides = array<i32>} : memref<8x256xf32, #tpu.memory_space<vmem>>, vector<8x256xf32>,
    return
  }
  func.func @transform_0(%arg0: i32) -> (i32, i32) {
    %c0_i32 = arith.constant 0 : i32
    %c0_i32_0 = arith.constant 0 : i32
    return %arg0, %c0_i32 : i32, i32
  }
  func.func @transform_1(%arg0: i32) -> (i32, i32) {
    %c0_i32 = arith.constant 0 : i32
    %c0_i32_0 = arith.constant 0 : i32
    return %arg0, %c0_i32 : i32, i32
  }
}

</mosaic_0001>

<bundles_post_ra>
// kernel: tpu_custom_call.1
= control target key start
LH: loop header
LB: loop body
LE: loop exit
PB: predicated region body
PF: predicated region fallthrough
CT: control target
= control target key end

     0   :  { %6 = vsyncpa [#allocation3], 0  ;;  %s146_s0 = inlined_call_operand.hbm [shape: f32[8,256], index: 0, kind: input, shape index: {}]   ;;  %s147_s1 = inlined_call_operand.hbm [shape: f32[8,256], index: 1, kind: output, shape index: {}]  }
   0x1   :  { %7 = vsyncpa [#allocation4], 0  ;;  %s110_s6 = smov [#allocation2]   ;;  %s62_s10 = scalar_lea.hbm %s146_s0, 256 }
   0x2   :  { %s14_s7 = sshll.u32 %s110_s6, 4  ;;  %p63_p0 = scmp.ne.s32.totalorder %s146_s0, %s62_s10  ;;  %s15_s7 = int_to_ptr.vmem [resolvable:$true] %s14_s7 }
   0x3   :  { %p66_p1 = scmp.lt.u32.totalorder %s62_s10, %s146_s0 }
   0x5   :  { %p68_p2 = pnand %p66_p1, %p63_p0 }
   0x7   :  { %71 = shalt.err (!%p68_p2)
}
   0x8   :  { %s72_s15 = scalar_lea.vmem %s15_s7, 256  ;;  %p77_p4 = scmp.lt.s32.totalorder %s15_s7, %s15_s7 }
   0x9   :  { %p73_p3 = scmp.ne.s32.totalorder %s15_s7, %s72_s15  ;;  %p78_p5 = scmp.lt.s32.totalorder %s72_s15, %s72_s15 }
   0xb   :  { %p79_p6 = por %p78_p5, %p77_p4 }
   0xd   :  { %p80_p7 = pnand %p79_p6, %p73_p3 }
   0xf   :  { %83 = shalt.err (!%p80_p7)
}
  0x10   :  { %17 = dma.hbm_to_vmem [thread:$0]  %s146_s0, 256, %s15_s7, [#allocation3]  }
  0x11   :  { %106 = dma.done.wait [#allocation3], 256  }
  0x12   :  { %107 = vsyncadd [#allocation3], 4294967040  ;;  %v21_v0 = vld [vmem:[#allocation2] sm:$0xff]  ;;  %v22_v1 = vld [vmem:[#allocation2 + $0x8] sm:$0xff]  ;;  %s111_s0 = smov [#allocation5]  }
  0x13   :  { %v23_v2 = vmul.f32 %v21_v0, %v21_v0  ;;  %v24_v3 = vmul.f32 %v22_v1, %v22_v1  ;;  %v31_v10 = vmul.f32 0.5, %v21_v0  ;;  %v32_v12 = vmul.f32 0.5, %v22_v1  ;;  %s47_s18 = sshll.u32 %s111_s0, 4  ;;  %s48_s18 = int_to_ptr.vmem [resolvable:$true] %s47_s18 }
  0x14   :  { %s84_s19 = scalar_lea.vmem %s48_s18, 256  ;;  %p89_p9 = scmp.lt.s32.totalorder %s48_s18, %s48_s18 }
  0x15   :  { %v25_v4 = vmul.f32 0.035677407, %v23_v2  ;;  %v26_v5 = vmul.f32 0.035677407, %v24_v3  ;;  %p85_p8 = scmp.ne.s32.totalorder %s48_s18, %s84_s19  ;;  %p90_p10 = scmp.lt.s32.totalorder %s84_s19, %s84_s19 }
  0x17   :  { %v27_v6 = vadd.f32 0.7978846, %v25_v4  ;;  %v28_v7 = vadd.f32 0.7978846, %v26_v5  ;;  %p91_p11 = por %p90_p10, %p89_p9 }
  0x19   :  { %v29_v8 = vmul.f32 %v27_v6, %v21_v0  ;;  %v30_v9 = vmul.f32 %v28_v7, %v22_v1  ;;  %p92_p12 = pnand %p91_p11, %p85_p8 }
  0x1b   :  { %58 = vtanh.f32 %v29_v8 }
  0x1c   :  { %60 = vtanh.f32 %v30_v9 }
  0x25   :  { %v59_v11 = vpop.eup %58 }
  0x26   :  { %v61_v13 = vpop.eup %60  ;;  %v35_v14 = vadd.f32 1.0, %v59_v11 }
  0x27   :  { %v36_v15 = vadd.f32 1.0, %v61_v13 }
  0x28   :  { %v37_v16 = vmul.f32 %v35_v14, %v31_v10 }
  0x29   :  { %v38_v17 = vmul.f32 %v36_v15, %v32_v12 }
  0x2a   :  { %39 = vst [vmem:[#allocation5] sm:$0xff] %v37_v16 }
  0x2b   :  { %40 = vst [vmem:[#allocation5 + $0x8] sm:$0xff] %v38_v17 }
  0x2c   :  { %95 = shalt.err (!%p92_p12)
}
  0x2d   :  { %s96_s22 = scalar_lea.hbm %s147_s1, 256 }
  0x2e   :  { %p97_p13 = scmp.ne.s32.totalorder %s147_s1, %s96_s22  ;;  %p100_p0 = scmp.lt.u32.totalorder %s96_s22, %s147_s1 }
  0x30   :  { %p102_p1 = pnand %p100_p0, %p97_p13 }
  0x32   :  { %105 = shalt.err (!%p102_p1)
}
  0x33   :  { %50 = dma.vmem_to_hbm [thread:$0]  %s48_s18, 256, %s147_s1, [#allocation4]  }
  0x34   :  { %108 = dma.done.wait [#allocation4], 256  }
  0x35   :  { %109 = vsyncadd [#allocation4], 4294967040 }
  0x36   :  { %54 = vsyncpa [#allocation3], 1 }
  0x37   :  { %55 = vsyncpa [#allocation4], 1 }

</bundles_post_ra>
